<compile_context>
chip_gen: v7x
topology: tpu7x:2x2x1
jax: 0.10.0
libtpu: 0.0.40
codegen_flags: <defaults>
</compile_context>

<pallas_src>
import math

import jax
import jax.numpy as jnp
from jax.experimental import pallas as pl
from jax.experimental.pallas import tpu as pltpu


def _make_kernel(pad_correction: float):
    """Kernel over one packed (3, padded) tile. `pad_correction` is static."""

    def _aml_kernel(in_ref, wb_ref, sum_ref):
        p = in_ref[0:1, :]        # (1, P) params      (padded lanes = 1.0)
        mw = in_ref[1:2, :]       # (1, P) min_weights (padded lanes = 0.0)
        losses = in_ref[2:3, :]   # (1, P) losses      (padded lanes = 0.0)

        p2 = p * p
        # EUP approximate reciprocal + one Newton step: keeps the 1e-5
        # tolerance while moving the divide off the VALU slots.
        r = pl.reciprocal(p2, approx=True)
        r = r * (2.0 - p2 * r)
        w = 0.5 * r + mw
        b = jnp.log(1.0 + p2)     # matches torch.log(1 + p**2)

        # One full-block store instead of per-row partial sublane stores.
        wb_ref[...] = jnp.concatenate([w, b], axis=0)

        # Padded lanes: w*losses = 0 (losses pad to 0) and b = log(2)
        # (params pad to 1), so a trace-time constant correction replaces
        # the iota mask of v2.
        sum_ref[0, 0] = jnp.sum(w * losses + b) - pad_correction

    return _aml_kernel


@jax.jit
def automatic_metric_loss(params, min_weights, losses):
    """params, min_weights, losses: 1-D float arrays of length num.

    Returns (loss_sum scalar, weights (num,), bias (num,)).
    """
    num = params.shape[0]
    if num == 0:  # empty block would not lower; trivial answer.
        z = jnp.zeros((0,), jnp.float32)
        return jnp.zeros((), jnp.float32), z, z

    padded = ((num + 127) // 128) * 128   # lane-dense last dim

    def _row(x, pad_value):
        return jnp.pad(x.astype(jnp.float32), (0, padded - num),
                       constant_values=pad_value)

    # Single fused packing op -> one (3, padded) buffer, one input DMA.
    packed = jnp.stack(
        [_row(params, 1.0), _row(min_weights, 0.0), _row(losses, 0.0)], axis=0)

    pad_correction = float(padded - num) * math.log(2.0)

    wb, loss_sum = pl.pallas_call(
        _make_kernel(pad_correction),
        out_shape=(
            jax.ShapeDtypeStruct((2, padded), jnp.float32),  # rows: w, b
            jax.ShapeDtypeStruct((1, 1), jnp.float32),       # loss_sum scalar
        ),
        in_specs=[pl.BlockSpec(memory_space=pltpu.MemorySpace.VMEM)],
        out_specs=(
            pl.BlockSpec(memory_space=pltpu.MemorySpace.VMEM),
            pl.BlockSpec(memory_space=pltpu.MemorySpace.SMEM),
        ),
    )(packed)

    wb_valid = wb[:, :num]                # one post-kernel slice
    return loss_sum[0, 0], wb_valid[0], wb_valid[1]


def _ref_forward(params, min_weights, losses):
    """Pure-JAX reference mirroring the PyTorch loop (vectorized)."""
    p2 = params.astype(jnp.float32) ** 2
    w = 0.5 / p2 + min_weights.astype(jnp.float32)
    b = jnp.log(1.0 + p2)
    loss_sum = jnp.sum(w * losses.astype(jnp.float32) + b)
    return loss_sum, w, b


if __name__ == "__main__":
    num = 2
    init_weight = 1.0
    # Matches nn.Parameter(torch.ones(num) * init_weight)
    params = jnp.ones((num,), dtype=jnp.float32) * init_weight
    min_weights = jnp.asarray([0.0, 0.0], dtype=jnp.float32)

    # Deterministic example per-task losses (the *x inputs to forward).
    key = jax.random.PRNGKey(0)
    losses = jax.random.uniform(key, (num,), dtype=jnp.float32) * 2.0 + 0.1

    loss_sum, weights, bias = automatic_metric_loss(params, min_weights, losses)
    jax.block_until_ready((loss_sum, weights, bias))

    ref_sum, ref_w, ref_b = _ref_forward(params, min_weights, losses)
    assert jnp.allclose(loss_sum, ref_sum, rtol=1e-5, atol=1e-5)
    assert jnp.allclose(weights, ref_w, rtol=1e-5, atol=1e-5)
    assert jnp.allclose(bias, ref_b, rtol=1e-5, atol=1e-5)

    print("KERNEL_OK")
</pallas_src>

<mosaic_0001>
module attributes {stable_mosaic.version = 11 : i64} {
  func.func @_aml_kernel(%arg0: memref<3x128xf32, #tpu.memory_space<vmem>>, %arg1: memref<2x128xf32, #tpu.memory_space<vmem>>, %arg2: memref<1x1xf32, #tpu.memory_space<smem>>) attributes {dimension_semantics = [], scalar_prefetch = 0 : i64, scratch_operands = 0 : i64, tpu.core_type = #tpu.core_type<tc>} {
    %c0 = arith.constant 0 : index
    %c0_0 = arith.constant 0 : index
    %0 = vector.load %arg0[%c0, %c0_0] : memref<3x128xf32, #tpu.memory_space<vmem>>, vector<1x128xf32>
    %c1 = arith.constant 1 : index
    %c0_1 = arith.constant 0 : index
    %1 = vector.load %arg0[%c1, %c0_1] : memref<3x128xf32, #tpu.memory_space<vmem>>, vector<1x128xf32>
    %c2 = arith.constant 2 : index
    %c0_2 = arith.constant 0 : index
    %2 = vector.load %arg0[%c2, %c0_2] : memref<3x128xf32, #tpu.memory_space<vmem>>, vector<1x128xf32>
    %3 = arith.mulf %0, %0 : vector<1x128xf32>
    %4 = tpu.reciprocal %3 {approx = true} : vector<1x128xf32> -> vector<1x128xf32>
    %5 = arith.mulf %3, %4 : vector<1x128xf32>
    %cst = arith.constant 2.000000e+00 : f32
    %6 = vector.broadcast %cst : f32 to vector<1x128xf32>
    %7 = arith.subf %6, %5 : vector<1x128xf32>
    %8 = arith.mulf %4, %7 : vector<1x128xf32>
    %cst_3 = arith.constant 5.000000e-01 : f32
    %9 = vector.broadcast %cst_3 : f32 to vector<1x128xf32>
    %10 = arith.mulf %9, %8 : vector<1x128xf32>
    %11 = arith.addf %10, %1 : vector<1x128xf32>
    %cst_4 = arith.constant 1.000000e+00 : f32
    %12 = vector.broadcast %cst_4 : f32 to vector<1x128xf32>
    %13 = arith.addf %12, %3 : vector<1x128xf32>
    %14 = math.log %13 : vector<1x128xf32>
    %15 = tpu.concatenate %11, %14 in 0 : vector<1x128xf32>, vector<1x128xf32> -> vector<2x128xf32>
    %c0_5 = arith.constant 0 : index
    %c0_6 = arith.constant 0 : index
    %16 = vector.load %arg1[%c0_5, %c0_6] : memref<2x128xf32, #tpu.memory_space<vmem>>, vector<2x128xf32>
    tpu.vector_store %arg1[%c0_5, %c0_6], %15 {strides = array<i32>} : memref<2x128xf32, #tpu.memory_space<vmem>>, vector<2x128xf32>,
    %17 = arith.mulf %11, %2 : vector<1x128xf32>
    %18 = arith.addf %17, %14 : vector<1x128xf32>
    %19 = vector.shape_cast %18 : vector<1x128xf32> to vector<1x1x128xf32>
    %cst_7 = arith.constant dense<0.000000e+00> : vector<1xf32>
    %20 = vector.multi_reduction <add>, %19, %cst_7 [1, 2] : vector<1x1x128xf32> to vector<1xf32>
    %21 = vector.shape_cast %20 : vector<1xf32> to vector<1x1x1xf32>
    %22 = vector.extract %21[0, 0, 0] : f32 from vector<1x1x1xf32>
    %cst_8 = arith.constant 87.3365478 : f32
    %23 = arith.subf %22, %cst_8 : f32
    %c0_9 = arith.constant 0 : index
    %c0_10 = arith.constant 0 : index
    %24 = memref.load %arg2[%c0_9, %c0_10] : memref<1x1xf32, #tpu.memory_space<smem>>
    memref.store %23, %arg2[%c0_9, %c0_10] : memref<1x1xf32, #tpu.memory_space<smem>>
    return
  }
}

</mosaic_0001>

<bundles_post_ra>
// kernel: automatic_metric_loss.1
= control target key start
LH: loop header
LB: loop body
LE: loop exit
PB: predicated region body
PF: predicated region fallthrough
CT: control target
= control target key end

     0   :  { %s122_s0 = inlined_call_operand.vmem [shape: f32[3,128], index: 0, kind: input, shape index: {}]   ;;  %s123_s1 = inlined_call_operand.vmem [shape: f32[2,128], index: 1, kind: output, shape index: {0}]   ;;  %s124_s2 = inlined_call_operand.hbm [shape: f32[1,1], index: 2, kind: output, shape index: {1}]  }
   0x1   :  { %v11_v0 = vld [vmem:[%s122_s0] sm:$0x1] }
   0x2   :  { %v14_v1 = vmul.f32 %v11_v0, %v11_v0 }
   0x3   :  { %8 = vsyncpa [#allocation3], 0  ;;  %v12_v9 = vld [vmem:[%s122_s0 + $0x1] sm:$0x1]  ;;  %v13_v12 = vld [vmem:[%s122_s0 + $0x2] sm:$0x1] }
   0x4   :  { %66 = vrcp.f32 %v14_v1  ;;  %v21_v2 = vadd.f32 1.0, %v14_v1  ;;  %vm27_vm0 = vcmask 1040384   ;;  %s70_s20 = scalar_lea.hbm %s124_s2, 16 }
   0x5   :  { %p71_p0 = scmp.ne.s32.totalorder %s124_s2, %s70_s20  ;;  %p74_p1 = scmp.lt.u32.totalorder %s70_s20, %s124_s2 }
   0x6   :  { %68 = vlog2.f32 %v21_v2 }
   0x7   :  { %p76_p2 = pnand %p74_p1, %p71_p0 }
   0xe   :  { %v67_v3 = vpop.eup %66 }
   0xf   :  { %v16_v4 = vmul.f32 %v67_v3, %v14_v1 }
  0x10   :  { %v69_v5 = vpop.eup %68 }
  0x11   :  { %v17_v6 = vsub.f32 2.0, %v16_v4  ;;  %v23_v8 = vmul.f32 0.6931472, %v69_v5 }
  0x13   :  { %v18_v7 = vmul.f32 %v67_v3, %v17_v6  ;;  %v25_v11 = vrot.slane %v23_v8, 7 }
  0x15   :  { %v19_v10 = vmul.f32 0.5, %v18_v7 }
  0x17   :  { %v20_v13 = vadd.f32 %v19_v10, %v12_v9 }
  0x19   :  { %v28_v14 = vsel %vm27_vm0, %v20_v13, %v25_v11  ;;  %v30_v15 = vmul.f32 %v20_v13, %v13_v12 }
  0x1a   :  { %29 = vst [vmem:[%s123_s1] sm:$0x3] %v28_v14 }
  0x1b   :  { %v31_v16 = vadd.f32 %v30_v15, %v23_v8 }
  0x1d   :  { %v32_v17 = vsel %vm27_vm0, %v31_v16, 0.0 }
  0x1e   :  { %33 = vadd.xlane.f32.xlu0 %v32_v17 }
  0xab   :  { %v34_v18 = vpop.xlane.xlu0 %33 }
  0xac   :  { %v35_v19 = vrot.slane %v34_v18, 4 }
  0xae   :  { %v36_v20 = vadd.f32 %v35_v19, %v34_v18 }
  0xb0   :  { %v37_v21 = vrot.slane %v36_v20, 2 }
  0xb2   :  { %v38_v22 = vadd.f32 %v37_v21, %v36_v20 }
  0xb4   :  { %v39_v23 = vrot.slane %v38_v22, 1 }
  0xb6   :  { %v40_v24 = vadd.f32 %v39_v23, %v38_v22 }
  0xb8   :  { %63 = vpush %v40_v24 }
  0xe9   :  { %s64_s0 = spop %63 }
  0xea   :  { %s62_s17 = sadd.f32 -87.33655, %s64_s0 }
  0xec   :  { %44 = sst [smem:[#allocation2]] %s62_s17 }
  0xed   :  { %79 = shalt.err (!%p76_p2)
}
  0xee   :  { %s82_s24 = smov [#allocation2]  }
  0xef   :  { %54 = dma.smem_to_hbm %s82_s24, 16, %s124_s2, [#allocation3]  }
  0xf0   :  { %80 = dma.done.wait [#allocation3], 16  }
  0xf1   :  { %81 = vsyncadd [#allocation3], 4294967280 }
  0xf2   :  { %60 = sfence }
  0xf3   :  { %61 = vsyncpa [#allocation3], 1 }

</bundles_post_ra>
